<compile_context>
chip_gen: v6e
topology: v6e:2x2x1
jax: 0.10.0
libtpu: 0.0.40
codegen_flags: <defaults>
</compile_context>

<pallas_src>
import jax
import jax.numpy as jnp
from jax.experimental import pallas as pl
from jax.experimental.pallas import tpu as pltpu


def _poi4d_kernel(col_ref, row_ref, out_ref):
    # col_ref: (t1, 1)   -param_a * a[i]                      (sublane axis)
    # row_ref: (1, tw)   -param_a * (b+c+d)[j], each repeated N3*N4 times
    # out_ref: (t1, tw)  output dtype
    out_ref[...] = (col_ref[...] + row_ref[...]).astype(out_ref.dtype)


def _divisors(n):
    return [d for d in range(1, n + 1) if n % d == 0]


def _sublane_multiple(itemsize):
    # Sub-32-bit dtypes pack along sublanes; keep block heights aligned to the
    # packing factor so tile edges don't fall back to masked partial stores.
    return {4: 8, 2: 16, 1: 32}.get(int(itemsize), 8)


def _pick_tiles(n1, w_pad, itemsize, max_block_bytes):
    """Pick (t1, tw): tw a multiple-of-128 divisor of w_pad, t1 a sublane
    aligned divisor of n1 (or the full dim), block bytes <= max_block_bytes."""
    sub = _sublane_multiple(itemsize)

    lane_cands = [d for d in _divisors(w_pad) if d % 128 == 0]
    fitting = [d for d in lane_cands if d * sub * itemsize <= max_block_bytes]
    tw = max(fitting) if fitting else min(lane_cands)

    t1_cands = [d for d in _divisors(n1) if d % sub == 0] or [n1]
    fitting = [d for d in t1_cands if d * tw * itemsize <= max_block_bytes]
    t1 = max(fitting) if fitting else min(t1_cands)

    # If t1 fell back to a non-fitting minimum (n1 has no sub-aligned divisor),
    # shrink tw; halving preserves divisibility of w_pad and 128-alignment.
    while (t1 * tw * itemsize > max_block_bytes and tw % 2 == 0
           and (tw // 2) % 128 == 0):
        tw //= 2

    # Keep >= 2 parallel blocks for v7x megacore when the slab is big enough.
    if n1 // t1 == 1 and w_pad // tw == 1 and n1 * w_pad * itemsize >= (2 << 20):
        smaller = [d for d in _divisors(n1) if d % sub == 0 and d < n1]
        if smaller:
            t1 = max(smaller)

    return t1, tw


def poi2d_with_a_4d_1(input1, input2, input3, input4, param_a,
                      max_block_bytes=8 << 20):
    n1, n2, n3, n4 = (input1.shape[0], input2.shape[0],
                      input3.shape[0], input4.shape[0])
    if not (n1 == n2 == n3 == n4):
        raise ValueError("Poi2d_with_a_4D_1 requires all inputs to share dim 0")
    dtype = input1.dtype
    itemsize = jnp.dtype(dtype).itemsize
    n34 = n3 * n4
    w = n2 * n34
    w_pad = ((w + 127) // 128) * 128      # lane-dense (128-aligned) slab width

    # ---- tiny O(N) preprocessing in f32 (slice column 0, polynomial, scale) --
    pa = jnp.asarray(param_a, dtype=jnp.float32)

    def poly(x):
        v = x[:, 0].astype(jnp.float32)
        return v * v - v

    a = poly(input1)                                      # (N1,)
    s = poly(input2) + poly(input3) + poly(input4)        # (N2,)
    col = ((-pa) * a).reshape(n1, 1)                      # (N1, 1)
    row = jnp.repeat((-pa) * s, n34)                      # (W,)
    if w_pad != w:
        row = jnp.pad(row, (0, w_pad - w))
    row = row.reshape(1, w_pad)                           # (1, W_pad) lane-dense

    # Narrow float outputs: add natively in that dtype (no full-tile cast).
    feed_dtype = dtype if jnp.dtype(dtype) in (jnp.bfloat16, jnp.float16) \
        else jnp.float32
    col = col.astype(feed_dtype)
    row = row.astype(feed_dtype)

    # ---- tile selection ------------------------------------------------------
    t1, tw = _pick_tiles(n1, w_pad, itemsize, max_block_bytes)
    grid = (w_pad // tw, n1 // t1)        # w outer -> row block stays resident

    out_flat = pl.pallas_call(
        _poi4d_kernel,
        out_shape=jax.ShapeDtypeStruct((n1, w_pad), dtype),
        grid_spec=pltpu.PrefetchScalarGridSpec(
            num_scalar_prefetch=0,
            grid=grid,
            in_specs=[
                pl.BlockSpec((t1, 1), lambda wi, ii: (ii, 0)),   # column term
                pl.BlockSpec((1, tw), lambda wi, ii: (0, wi)),   # row term
            ],
            out_specs=pl.BlockSpec((t1, tw), lambda wi, ii: (ii, wi)),
        ),
        compiler_params=pltpu.CompilerParams(
            dimension_semantics=("parallel", "parallel"),
            vmem_limit_bytes=32 << 20),
        cost_estimate=pl.CostEstimate(
            flops=n1 * w_pad,
            transcendentals=0,
            bytes_accessed=n1 * w_pad * itemsize + (n1 + w_pad) * itemsize),
    )(col, row)

    if w_pad != w:
        out_flat = out_flat[:, :w]
    # Row-major reshape back to the 4D layout is free.
    return out_flat.reshape(n1, n2, n3, n4)


def _reference(input1, input2, input3, input4, param_a):
    """Pure-JAX transcription of the literal PyTorch ops (repeat/reshape/movedim)."""
    n1, n2, n3, n4 = (input1.shape[0], input2.shape[0],
                      input3.shape[0], input4.shape[0])
    a = (input1[:, 0] ** 2 - input1[:, 0]).reshape(n1, 1)
    b = (input2[:, 0] ** 2 - input2[:, 0]).reshape(n1, 1)
    c = (input3[:, 0] ** 2 - input3[:, 0]).reshape(n1, 1)
    d = (input4[:, 0] ** 2 - input4[:, 0]).reshape(n1, 1)
    a_1 = jnp.tile(a, (1, n2 * n3 * n4)).reshape(n1, n2, n3, n4)
    b_1 = jnp.moveaxis(jnp.tile(b, (1, n1 * n3 * n4)).reshape(n2, n3, n4, n1), 0, 1)
    c_1 = jnp.moveaxis(jnp.tile(c, (1, n1 * n2 * n4)).reshape(n3, n4, n1, n2), 0, 1)
    d_1 = jnp.moveaxis(jnp.tile(d, (1, n1 * n2 * n3)).reshape(n4, n1, n2, n3), 0, 1)
    return -param_a * (a_1 + b_1 + c_1 + d_1)


if __name__ == "__main__":
    key = jax.random.PRNGKey(0)
    k1, k2, k3, k4 = jax.random.split(key, 4)
    N, C = 16, 4  # all four inputs must share N (the .view(sx1[0], 1) calls require it)

    input1 = jax.random.uniform(k1, (N, C), dtype=jnp.float32)
    input2 = jax.random.uniform(k2, (N, C), dtype=jnp.float32)
    input3 = jax.random.uniform(k3, (N, C), dtype=jnp.float32)
    input4 = jax.random.uniform(k4, (N, C), dtype=jnp.float32)
    param_a = jnp.float32(0.5)  # deterministic scalar parameter

    out = poi2d_with_a_4d_1(input1, input2, input3, input4, param_a)
    out = jax.block_until_ready(out)

    ref = _reference(input1, input2, input3, input4, param_a)
    assert out.shape == (N, N, N, N), out.shape
    assert jnp.allclose(out, ref, atol=1e-5, rtol=1e-5), "mismatch vs reference"

    print("KERNEL_OK")
</pallas_src>

<mosaic_0001>
module attributes {stable_mosaic.version = 11 : i64} {
  func.func @_poi4d_kernel(%arg0: i32, %arg1: i32, %arg2: memref<16x1xf32, #tpu.memory_space<vmem>>, %arg3: memref<1x4096xf32, #tpu.memory_space<vmem>>, %arg4: memref<16x4096xf32, #tpu.memory_space<vmem>>) attributes {dimension_semantics = [#tpu.dimension_semantics<parallel>, #tpu.dimension_semantics<parallel>], iteration_bounds = array<i64: 1, 1>, scalar_prefetch = 0 : i64, scratch_operands = 0 : i64, tpu.core_type = #tpu.core_type<tc>, window_params = [{transform_indices = @transform_0, window_bounds = array<i64: 16, 1>}, {transform_indices = @transform_1, window_bounds = array<i64: 1, 4096>}, {transform_indices = @transform_2, window_bounds = array<i64: 16, 4096>}]} {
    %c0 = arith.constant 0 : index
    %c0_0 = arith.constant 0 : index
    %0 = vector.load %arg2[%c0, %c0_0] : memref<16x1xf32, #tpu.memory_space<vmem>>, vector<16x1xf32>
    %c0_1 = arith.constant 0 : index
    %c0_2 = arith.constant 0 : index
    %1 = vector.load %arg3[%c0_1, %c0_2] : memref<1x4096xf32, #tpu.memory_space<vmem>>, vector<1x4096xf32>
    %2 = vector.broadcast %0 : vector<16x1xf32> to vector<16x4096xf32>
    %3 = vector.broadcast %1 : vector<1x4096xf32> to vector<16x4096xf32>
    %4 = arith.addf %2, %3 : vector<16x4096xf32>
    %c0_3 = arith.constant 0 : index
    %c0_4 = arith.constant 0 : index
    %5 = vector.load %arg4[%c0_3, %c0_4] : memref<16x4096xf32, #tpu.memory_space<vmem>>, vector<16x4096xf32>
    tpu.vector_store %arg4[%c0_3, %c0_4], %4 {strides = array<i32>} : memref<16x4096xf32, #tpu.memory_space<vmem>>, vector<16x4096xf32>,
    return
  }
  func.func @transform_0(%arg0: i32, %arg1: i32) -> (i32, i32) {
    %c0_i32 = arith.constant 0 : i32
    %c0_i32_0 = arith.constant 0 : i32
    return %arg1, %c0_i32 : i32, i32
  }
  func.func @transform_1(%arg0: i32, %arg1: i32) -> (i32, i32) {
    %c0_i32 = arith.constant 0 : i32
    %c0_i32_0 = arith.constant 0 : i32
    return %c0_i32, %arg0 : i32, i32
  }
  func.func @transform_2(%arg0: i32, %arg1: i32) -> (i32, i32) {
    %c0_i32 = arith.constant 0 : i32
    return %arg1, %arg0 : i32, i32
  }
}

</mosaic_0001>

<bundles_post_ra>
// kernel: tpu_custom_call.1
= control target key start
LH: loop header
LB: loop body
LE: loop exit
PB: predicated region body
PF: predicated region fallthrough
CT: control target
= control target key end

     0   :  { %7 = vsyncpa [#allocation3], 0  ;;  %s600_s0 = inlined_call_operand.vmem [shape: f32[16,1], index: 0, kind: input, shape index: {}]   ;;  %s601_s1 = inlined_call_operand.hbm [shape: f32[1,4096], index: 1, kind: input, shape index: {}]   ;;  %s602_s2 = inlined_call_operand.hbm [shape: f32[16,4096], index: 2, kind: output, shape index: {}]  }
   0x1   :  { %8 = vsyncpa [#allocation4], 0  ;;  %s399_s9 = smov [#allocation2]  }
   0x2   :  { %s17_s10 = sshll.u32 %s399_s9, 4  ;;  %s18_s10 = int_to_ptr.vmem [resolvable:$true] %s17_s10 }
   0x3   :  { %s363_s11 = scalar_lea.vmem %s18_s10, 512  ;;  %p368_p1 = scmp.lt.s32.totalorder %s18_s10, %s18_s10 }
   0x4   :  { %p364_p0 = scmp.ne.s32.totalorder %s18_s10, %s363_s11  ;;  %p369_p2 = scmp.lt.s32.totalorder %s363_s11, %s363_s11 }
   0x6   :  { %p370_p3 = por %p369_p2, %p368_p1 }
   0x8   :  { %p371_p4 = pnand %p370_p3, %p364_p0 }
   0xa   :  { %374 = shalt.err (!%p371_p4)
}
   0xb   :  { %20 = dma.hbm_to_vmem [thread:$0]  %s601_s1, 512, %s18_s10, [#allocation3]  }
   0xc   :  { %395 = dma.done.wait [#allocation3], 512  }
   0xd   :  { %396 = vsyncadd [#allocation3], 4294966784  ;;  %v400_v0 = vmov 0   ;;  %v24_v1 = vld [vmem:[%s600_s0] sm:$0xff]  ;;  %v25_v2 = vld [vmem:[%s600_s0 + $0x8] sm:$0xff]  ;;  %v44_v3 = vlaneseq  ;;  %s401_s0 = smov [#allocation5]  }
   0xe   :  { %354 = vset.pattern.permute.xlu0 %v400_v0  ;;  %v26_v9 = vld [vmem:[#allocation2] sm:$0xff]  ;;  %v27_v14 = vld [vmem:[#allocation2 + $0x8] sm:$0xff]  ;;  %v28_v19 = vld [vmem:[#allocation2 + $0x10] sm:$0xff]  ;;  %s337_s1 = sshll.u32 %s401_s0, 4  ;;  %s582_s1 = int_to_ptr.vmem [resolvable:$true] %s337_s1 }
   0xf   :  { %32 = vperm.xlu0 %354, %v24_v1   ;;  %v45_v4 = vshrl.u32 %v44_v3, 7  ;;  %v29_v28 = vld [vmem:[#allocation2 + $0x18] sm:$0xff]  ;;  %s375_s18 = scalar_lea.vmem %s582_s1, 8192  ;;  %p380_p6 = scmp.lt.s32.totalorder %s582_s1, %s582_s1 }
  0x10   :  { %p376_p5 = scmp.ne.s32.totalorder %s582_s1, %s375_s18  ;;  %p381_p7 = scmp.lt.s32.totalorder %s375_s18, %s375_s18 }
  0x11   :  { %v46_v5 = vsub.s32 0, %v45_v4  ;;  %v50_v6 = vsub.s32 1, %v45_v4  ;;  %v54_v7 = vsub.s32 2, %v45_v4  ;;  %v58_v8 = vsub.s32 3, %v45_v4 }
  0x12   :  { %v62_v10 = vsub.s32 4, %v45_v4  ;;  %v66_v11 = vsub.s32 5, %v45_v4  ;;  %v70_v12 = vsub.s32 6, %v45_v4  ;;  %v74_v13 = vsub.s32 7, %v45_v4  ;;  %p382_p8 = por %p381_p7, %p380_p6 }
  0x13   :  { %37 = vperm.xlu0 %354, %v25_v2   ;;  %v428_v15 = vrot.slane %v26_v9, %v46_v5  ;;  %v430_v16 = vrot.slane %v26_v9, %v50_v6  ;;  %v432_v17 = vrot.slane %v26_v9, %v54_v7  ;;  %v434_v18 = vrot.slane %v26_v9, %v58_v8 }
  0x14   :  { %v436_v20 = vrot.slane %v26_v9, %v62_v10  ;;  %v438_v21 = vrot.slane %v26_v9, %v66_v11  ;;  %v440_v22 = vrot.slane %v26_v9, %v70_v12  ;;  %v442_v23 = vrot.slane %v26_v9, %v74_v13  ;;  %p383_p9 = pnand %p382_p8, %p376_p5 }
  0x15   :  { %v444_v24 = vrot.slane %v27_v14, %v46_v5  ;;  %v446_v25 = vrot.slane %v27_v14, %v50_v6  ;;  %v448_v26 = vrot.slane %v27_v14, %v54_v7  ;;  %v450_v27 = vrot.slane %v27_v14, %v58_v8 }
  0x16   :  { %v452_v29 = vrot.slane %v27_v14, %v62_v10  ;;  %v454_v30 = vrot.slane %v27_v14, %v66_v11  ;;  %v456_v31 = vrot.slane %v27_v14, %v70_v12  ;;  %v458_v32 = vrot.slane %v27_v14, %v74_v13 }
  0x17   :  { %v460_v33 = vrot.slane %v28_v19, %v46_v5  ;;  %v462_v34 = vrot.slane %v28_v19, %v50_v6  ;;  %v464_v35 = vrot.slane %v28_v19, %v54_v7  ;;  %v466_v36 = vrot.slane %v28_v19, %v58_v8 }
  0x18   :  { %v468_v37 = vrot.slane %v28_v19, %v62_v10  ;;  %v470_v38 = vrot.slane %v28_v19, %v66_v11  ;;  %v472_v39 = vrot.slane %v28_v19, %v70_v12  ;;  %v474_v40 = vrot.slane %v28_v19, %v74_v13 }
  0x19   :  { %v476_v41 = vrot.slane %v29_v28, %v46_v5  ;;  %v478_v42 = vrot.slane %v29_v28, %v50_v6  ;;  %v480_v43 = vrot.slane %v29_v28, %v54_v7  ;;  %v482_v44 = vrot.slane %v29_v28, %v58_v8 }
  0x1a   :  { %v484_v46 = vrot.slane %v29_v28, %v62_v10  ;;  %v486_v47 = vrot.slane %v29_v28, %v66_v11  ;;  %v488_v48 = vrot.slane %v29_v28, %v70_v12  ;;  %v490_v49 = vrot.slane %v29_v28, %v74_v13 }
  0x8a   :  { %v33_v45 = vpop.permute.xlu0 %32 }
  0x8b   :  { %v204_v50 = vadd.f32 %v428_v15, %v33_v45  ;;  %v205_v51 = vadd.f32 %v430_v16, %v33_v45  ;;  %v206_v52 = vadd.f32 %v432_v17, %v33_v45  ;;  %v207_v53 = vadd.f32 %v434_v18, %v33_v45 }
  0x8c   :  { %v208_v54 = vadd.f32 %v436_v20, %v33_v45  ;;  %v209_v55 = vadd.f32 %v438_v21, %v33_v45  ;;  %v210_v56 = vadd.f32 %v440_v22, %v33_v45  ;;  %v211_v57 = vadd.f32 %v442_v23, %v33_v45 }
  0x8d   :  { %v212_v58 = vadd.f32 %v444_v24, %v33_v45  ;;  %v213_v59 = vadd.f32 %v446_v25, %v33_v45  ;;  %v214_v60 = vadd.f32 %v448_v26, %v33_v45  ;;  %v215_v61 = vadd.f32 %v450_v27, %v33_v45  ;;  %268 = vst [vmem:[#allocation5] sm:$0xff] %v204_v50 }
  0x8e   :  { %269 = vst [vmem:[#allocation5 + $0x8] sm:$0xff] %v205_v51  ;;  %270 = vst [vmem:[#allocation5 + $0x10] sm:$0xff] %v206_v52  ;;  %v216_v62 = vadd.f32 %v452_v29, %v33_v45  ;;  %v217_v63 = vadd.f32 %v454_v30, %v33_v45  ;;  %v218_v0 = vadd.f32 %v456_v31, %v33_v45  ;;  %v516_v10 = vpop.permute.xlu0 %37 }
  0x8f   :  { %271 = vst [vmem:[#allocation5 + $0x18] sm:$0xff] %v207_v53  ;;  %v219_v1 = vadd.f32 %v458_v32, %v33_v45  ;;  %272 = vst [vmem:[#allocation5 + $0x20] sm:$0xff] %v208_v54  ;;  %v220_v2 = vadd.f32 %v460_v33, %v33_v45  ;;  %v221_v3 = vadd.f32 %v462_v34, %v33_v45 }
  0x90   :  { %273 = vst [vmem:[#allocation5 + $0x28] sm:$0xff] %v209_v55  ;;  %274 = vst [vmem:[#allocation5 + $0x30] sm:$0xff] %v210_v56  ;;  %v222_v4 = vadd.f32 %v464_v35, %v33_v45  ;;  %v223_v5 = vadd.f32 %v466_v36, %v33_v45  ;;  %v224_v6 = vadd.f32 %v468_v37, %v33_v45 }
  0x91   :  { %275 = vst [vmem:[#allocation5 + $0x38] sm:$0xff] %v211_v57  ;;  %276 = vst [vmem:[#allocation5 + $0x40] sm:$0xff] %v212_v58  ;;  %v225_v7 = vadd.f32 %v470_v38, %v33_v45  ;;  %v226_v8 = vadd.f32 %v472_v39, %v33_v45  ;;  %v227_v9 = vadd.f32 %v474_v40, %v33_v45 }
  0x92   :  { %277 = vst [vmem:[#allocation5 + $0x48] sm:$0xff] %v213_v59  ;;  %278 = vst [vmem:[#allocation5 + $0x50] sm:$0xff] %v214_v60  ;;  %v228_v11 = vadd.f32 %v476_v41, %v33_v45  ;;  %v229_v12 = vadd.f32 %v478_v42, %v33_v45  ;;  %v230_v13 = vadd.f32 %v480_v43, %v33_v45 }
  0x93   :  { %279 = vst [vmem:[#allocation5 + $0x58] sm:$0xff] %v215_v61  ;;  %280 = vst [vmem:[#allocation5 + $0x60] sm:$0xff] %v216_v62  ;;  %v231_v14 = vadd.f32 %v482_v44, %v33_v45  ;;  %v232_v19 = vadd.f32 %v484_v46, %v33_v45  ;;  %v233_v28 = vadd.f32 %v486_v47, %v33_v45 }
  0x94   :  { %281 = vst [vmem:[#allocation5 + $0x68] sm:$0xff] %v217_v63  ;;  %282 = vst [vmem:[#allocation5 + $0x70] sm:$0xff] %v218_v0  ;;  %v234_v50 = vadd.f32 %v488_v48, %v33_v45  ;;  %v235_v51 = vadd.f32 %v490_v49, %v33_v45  ;;  %v236_v52 = vadd.f32 %v428_v15, %v516_v10 }
  0x95   :  { %283 = vst [vmem:[#allocation5 + $0x78] sm:$0xff] %v219_v1  ;;  %284 = vst [vmem:[#allocation5 + $0x80] sm:$0xff] %v220_v2  ;;  %v237_v53 = vadd.f32 %v430_v16, %v516_v10  ;;  %v238_v54 = vadd.f32 %v432_v17, %v516_v10  ;;  %v239_v45 = vadd.f32 %v434_v18, %v516_v10 }
  0x96   :  { %285 = vst [vmem:[#allocation5 + $0x88] sm:$0xff] %v221_v3  ;;  %286 = vst [vmem:[#allocation5 + $0x90] sm:$0xff] %v222_v4  ;;  %v240_v55 = vadd.f32 %v436_v20, %v516_v10  ;;  %v241_v56 = vadd.f32 %v438_v21, %v516_v10  ;;  %v242_v15 = vadd.f32 %v440_v22, %v516_v10 }
  0x97   :  { %287 = vst [vmem:[#allocation5 + $0x98] sm:$0xff] %v223_v5  ;;  %288 = vst [vmem:[#allocation5 + $0xa0] sm:$0xff] %v224_v6  ;;  %v243_v16 = vadd.f32 %v442_v23, %v516_v10  ;;  %v244_v17 = vadd.f32 %v444_v24, %v516_v10  ;;  %v245_v18 = vadd.f32 %v446_v25, %v516_v10 }
  0x98   :  { %289 = vst [vmem:[#allocation5 + $0xa8] sm:$0xff] %v225_v7  ;;  %290 = vst [vmem:[#allocation5 + $0xb0] sm:$0xff] %v226_v8  ;;  %v246_v57 = vadd.f32 %v448_v26, %v516_v10  ;;  %v247_v20 = vadd.f32 %v450_v27, %v516_v10  ;;  %v248_v21 = vadd.f32 %v452_v29, %v516_v10 }
  0x99   :  { %291 = vst [vmem:[#allocation5 + $0xb8] sm:$0xff] %v227_v9  ;;  %292 = vst [vmem:[#allocation5 + $0xc0] sm:$0xff] %v228_v11  ;;  %v249_v22 = vadd.f32 %v454_v30, %v516_v10  ;;  %v250_v23 = vadd.f32 %v456_v31, %v516_v10  ;;  %v251_v24 = vadd.f32 %v458_v32, %v516_v10 }
  0x9a   :  { %293 = vst [vmem:[#allocation5 + $0xc8] sm:$0xff] %v229_v12  ;;  %294 = vst [vmem:[#allocation5 + $0xd0] sm:$0xff] %v230_v13  ;;  %v252_v25 = vadd.f32 %v460_v33, %v516_v10  ;;  %v253_v26 = vadd.f32 %v462_v34, %v516_v10  ;;  %v254_v27 = vadd.f32 %v464_v35, %v516_v10 }
  0x9b   :  { %295 = vst [vmem:[#allocation5 + $0xd8] sm:$0xff] %v231_v14  ;;  %296 = vst [vmem:[#allocation5 + $0xe0] sm:$0xff] %v232_v19  ;;  %v255_v29 = vadd.f32 %v466_v36, %v516_v10  ;;  %v256_v30 = vadd.f32 %v468_v37, %v516_v10  ;;  %v257_v31 = vadd.f32 %v470_v38, %v516_v10 }
  0x9c   :  { %297 = vst [vmem:[#allocation5 + $0xe8] sm:$0xff] %v233_v28  ;;  %298 = vst [vmem:[#allocation5 + $0xf0] sm:$0xff] %v234_v50  ;;  %v258_v32 = vadd.f32 %v472_v39, %v516_v10  ;;  %v259_v33 = vadd.f32 %v474_v40, %v516_v10  ;;  %v260_v34 = vadd.f32 %v476_v41, %v516_v10 }
  0x9d   :  { %299 = vst [vmem:[#allocation5 + $0xf8] sm:$0xff] %v235_v51  ;;  %300 = vst [vmem:[#allocation5 + $0x100] sm:$0xff] %v236_v52  ;;  %v261_v35 = vadd.f32 %v478_v42, %v516_v10  ;;  %v262_v36 = vadd.f32 %v480_v43, %v516_v10  ;;  %v263_v37 = vadd.f32 %v482_v44, %v516_v10 }
  0x9e   :  { %301 = vst [vmem:[#allocation5 + $0x108] sm:$0xff] %v237_v53  ;;  %302 = vst [vmem:[#allocation5 + $0x110] sm:$0xff] %v238_v54  ;;  %v264_v38 = vadd.f32 %v484_v46, %v516_v10  ;;  %v265_v39 = vadd.f32 %v486_v47, %v516_v10  ;;  %v266_v40 = vadd.f32 %v488_v48, %v516_v10 }
  0x9f   :  { %303 = vst [vmem:[#allocation5 + $0x118] sm:$0xff] %v239_v45  ;;  %304 = vst [vmem:[#allocation5 + $0x120] sm:$0xff] %v240_v55  ;;  %v267_v41 = vadd.f32 %v490_v49, %v516_v10 }
  0xa0   :  { %305 = vst [vmem:[#allocation5 + $0x128] sm:$0xff] %v241_v56  ;;  %306 = vst [vmem:[#allocation5 + $0x130] sm:$0xff] %v242_v15 }
  0xa1   :  { %307 = vst [vmem:[#allocation5 + $0x138] sm:$0xff] %v243_v16  ;;  %308 = vst [vmem:[#allocation5 + $0x140] sm:$0xff] %v244_v17 }
  0xa2   :  { %309 = vst [vmem:[#allocation5 + $0x148] sm:$0xff] %v245_v18  ;;  %310 = vst [vmem:[#allocation5 + $0x150] sm:$0xff] %v246_v57 }
  0xa3   :  { %311 = vst [vmem:[#allocation5 + $0x158] sm:$0xff] %v247_v20  ;;  %312 = vst [vmem:[#allocation5 + $0x160] sm:$0xff] %v248_v21 }
  0xa4   :  { %313 = vst [vmem:[#allocation5 + $0x168] sm:$0xff] %v249_v22  ;;  %314 = vst [vmem:[#allocation5 + $0x170] sm:$0xff] %v250_v23 }
  0xa5   :  { %315 = vst [vmem:[#allocation5 + $0x178] sm:$0xff] %v251_v24  ;;  %316 = vst [vmem:[#allocation5 + $0x180] sm:$0xff] %v252_v25 }
  0xa6   :  { %317 = vst [vmem:[#allocation5 + $0x188] sm:$0xff] %v253_v26  ;;  %318 = vst [vmem:[#allocation5 + $0x190] sm:$0xff] %v254_v27 }
  0xa7   :  { %319 = vst [vmem:[#allocation5 + $0x198] sm:$0xff] %v255_v29  ;;  %320 = vst [vmem:[#allocation5 + $0x1a0] sm:$0xff] %v256_v30 }
  0xa8   :  { %321 = vst [vmem:[#allocation5 + $0x1a8] sm:$0xff] %v257_v31  ;;  %322 = vst [vmem:[#allocation5 + $0x1b0] sm:$0xff] %v258_v32 }
  0xa9   :  { %323 = vst [vmem:[#allocation5 + $0x1b8] sm:$0xff] %v259_v33  ;;  %324 = vst [vmem:[#allocation5 + $0x1c0] sm:$0xff] %v260_v34 }
  0xaa   :  { %325 = vst [vmem:[#allocation5 + $0x1c8] sm:$0xff] %v261_v35  ;;  %326 = vst [vmem:[#allocation5 + $0x1d0] sm:$0xff] %v262_v36 }
  0xab   :  { %327 = vst [vmem:[#allocation5 + $0x1d8] sm:$0xff] %v263_v37  ;;  %328 = vst [vmem:[#allocation5 + $0x1e0] sm:$0xff] %v264_v38 }
  0xac   :  { %329 = vst [vmem:[#allocation5 + $0x1e8] sm:$0xff] %v265_v39  ;;  %330 = vst [vmem:[#allocation5 + $0x1f0] sm:$0xff] %v266_v40 }
  0xad   :  { %331 = vst [vmem:[#allocation5 + $0x1f8] sm:$0xff] %v267_v41 }
  0xae   :  { %386 = shalt.err (!%p383_p9)
}
  0xaf   :  { %s402_s19 = smov 4096   ;;  %s403_s20 = smov 256  }
  0xb0   :  { %343 = dma.vmem_to_hbm [thread:$0]  %s582_s1, 8192, %s602_s2, [#allocation4], %s402_s19, %s402_s19, %s403_s20  }
  0xb1   :  { %397 = dma.done.wait [#allocation4], 8192  }
  0xb2   :  { %398 = vsyncadd [#allocation4], 4294959104 }
  0xb3   :  { %347 = vsyncpa [#allocation3], 1 }
  0xb4   :  { %348 = vsyncpa [#allocation4], 1 }

</bundles_post_ra>
